<compile_context>
chip_gen: v6e
topology: v6e:2x2x1
jax: 0.10.0
libtpu: 0.0.40
codegen_flags: <defaults>
</compile_context>

<pallas_src>
import jax
import jax.numpy as jnp
from jax.experimental import pallas as pl
from jax.experimental.pallas import tpu as pltpu

LANES = 128            # vreg lane width
ROW_ALIGN = 16         # row alignment (covers bf16 (16,128) and f32 (8,128) tiles)
MAX_TILE_ROWS = 2048   # 2048x128 f32 = 1 MiB/block; in+out double-buffered ~4 MiB
                       # -> fits even v5e's 16 MiB scoped-VMEM default
MIN_ROWS_FOR_TC_SPLIT = 64  # force >=2 grid steps (v7x megacore) once work is real


def _round_up(n, m):
    return ((n + m - 1) // m) * m


def _build_params(w1, b1, w2, b2):
    """Per-lane alternating weight/bias rows for the interleaved layout.

    Lane layout of an activation row: [e0_f0, e0_f1, e1_f0, e1_f1, ...], i.e.
    even lanes hold feature 0 and odd lanes hold feature 1 of the same batch
    element sitting in the neighbouring lane.

    For each layer (w stored [in, out], b [out]) we build:
      wa  : weight of the lane's own feature      (even: w[0,0], odd: w[1,1])
      wpe : partner weight, active on even lanes  (even: w[1,0], odd: 0)
            -- multiplies the *next* lane's value
      wpo : partner weight, active on odd lanes   (even: 0,     odd: w[0,1])
            -- multiplies the *previous* lane's value
      bb  : bias                                   (even: b[0],  odd: b[1])

    All rows are pre-multiplied by 0.5 so the kernel computes half
    pre-activations and gets sigmoid(z) = 0.5*tanh(z/2) + 0.5 with a single
    EUP tanh per layer (no divide, no extra 0.5*z multiply).
    """
    lane = jnp.arange(LANES)
    even = (lane % 2) == 0

    def alt(a, b):  # value `a` on even lanes, `b` on odd lanes
        return jnp.where(even, a, b)

    def layer_rows(w, b):
        wa = alt(w[0, 0], w[1, 1])
        wpe = alt(w[1, 0], 0.0)
        wpo = alt(0.0, w[0, 1])
        bb = alt(b[0], b[1])
        return [wa, wpe, wpo, bb]

    rows = layer_rows(w1, b1) + layer_rows(w2, b2)      # 8 rows of 128
    return (0.5 * jnp.stack(rows)).astype(jnp.float32)  # [8, 128] f32, 4 KiB


def xornet_kernel(params_ref, x_ref, o_ref):
    """One batch tile of the XORNet forward.

    x_ref / o_ref : [tile_rows, 128] (f32 or bf16) -- interleaved feature lanes.
    params_ref    : [8, 128] f32 resident in VMEM (constant block index), rows:
                    0..3 = layer1 (0.5*wa, 0.5*wpe, 0.5*wpo, 0.5*b)
                    4..7 = layer2 (same order).
    """
    x = x_ref[...].astype(jnp.float32)   # compute stays f32 (v5e-safe)

    wa1, wpe1, wpo1, bb1 = (params_ref[i:i + 1, :] for i in range(4))
    wa2, wpe2, wpo2, bb2 = (params_ref[i:i + 1, :] for i in range(4, 8))

    def layer(v, wa, wpe, wpo, bb):
        # Pair partner of lane i is lane i^1.  Pairs never straddle a row
        # (128 is even), so two static lane rotations (XLU slot, overlaps the
        # VPU FMAs) masked by the hoisted alternating weights do the 2x2 matmul.
        nxt = pltpu.roll(v, 127, axis=1)   # lane i <- lane (i+1) % 128
        prv = pltpu.roll(v, 1, axis=1)     # lane i <- lane (i-1) % 128
        pre_half = v * wa + nxt * wpe + prv * wpo + bb   # = 0.5 * (x @ W + b)
        return 0.5 * jnp.tanh(pre_half) + 0.5            # = sigmoid(x @ W + b)

    h = layer(x, wa1, wpe1, wpo1, bb1)
    o = layer(h, wa2, wpe2, wpo2, bb2)
    o_ref[...] = o.astype(o_ref.dtype)


@jax.jit
def xornet_forward(x, w1, b1, w2, b2):
    """XORNet forward.

    x       : [B, 2] float32 or bfloat16 (output matches x.dtype; compute is f32)
    w1, w2  : [in=2, out=2] float32 (transpose of PyTorch's [out, in] weights)
    b1, b2  : [2] float32
    returns : [B, 2] in x.dtype
    """
    B, F = x.shape
    assert F == 2 and w1.shape == (2, 2) and w2.shape == (2, 2)
    assert b1.shape == (2,) and b2.shape == (2,)

    n = 2 * B                                  # flattened scalar count
    rows = pl.cdiv(n, LANES)
    rows_al = _round_up(rows, ROW_ALIGN)

    # Tile selection: at most one tile's alignment of padding, and >=2 grid
    # steps once there is enough work so v7x's two TensorCores both get tiles.
    num_tiles = pl.cdiv(rows_al, MAX_TILE_ROWS)
    if num_tiles == 1 and rows_al >= MIN_ROWS_FOR_TC_SPLIT:
        num_tiles = 2
    tile_rows = _round_up(pl.cdiv(rows_al, num_tiles), ROW_ALIGN)
    num_tiles = pl.cdiv(rows_al, tile_rows)
    rows_pad = num_tiles * tile_rows
    n_pad = rows_pad * LANES

    params = _build_params(w1, b1, w2, b2)     # [8,128] f32, hoisted broadcasts

    # Natural interleaved layout: contiguous [B,2] -> [2B] -> [rows,128] is a
    # free reshape; only the (rare) tail padding costs an extra pass.
    x_flat = x.reshape(n)
    if n_pad != n:
        x_flat = jnp.pad(x_flat, (0, n_pad - n))
    x2d = x_flat.reshape(rows_pad, LANES)

    out2d = pl.pallas_call(
        xornet_kernel,
        out_shape=jax.ShapeDtypeStruct((rows_pad, LANES), x.dtype),
        grid=(num_tiles,),
        in_specs=[
            # 4 KiB parameter slab, same block every step -> stays resident.
            pl.BlockSpec((8, LANES), lambda i: (0, 0)),
            pl.BlockSpec((tile_rows, LANES), lambda i: (i, 0)),
            # TODO(synk): optionally pipeline_mode=pl.Buffered(3) on v6e/v7x.
        ],
        out_specs=pl.BlockSpec((tile_rows, LANES), lambda i: (i, 0)),
        compiler_params=pltpu.CompilerParams(
            # Row tiles are independent: auto-pipeline HBM DMA and shard the
            # axis across v7x's 2 TensorCores.
            dimension_semantics=("parallel",),
        ),
    )(params, x2d)

    out_flat = out2d.reshape(n_pad)
    if n_pad != n:
        out_flat = out_flat[:n]
    return out_flat.reshape(B, 2)


def reference_forward(x, w1, b1, w2, b2):
    h = jax.nn.sigmoid(x.astype(jnp.float32) @ w1 + b1)
    return jax.nn.sigmoid(h @ w2 + b2)


if __name__ == "__main__":
    # XORNet.__init__ parameters.  PyTorch stores Linear weights as [out, in];
    # we store the transpose [in, out] so the math is x @ W + b.
    w1 = jnp.array([[0.1, -0.1], [-0.1, 0.1]], dtype=jnp.float32).T
    w2 = jnp.array([[-0.1, 0.1], [0.1, -0.1]], dtype=jnp.float32).T
    b1 = jnp.array([0.1, -0.1], dtype=jnp.float32)
    b2 = jnp.array([-0.1, 0.1], dtype=jnp.float32)

    # Small deterministic input batch consistent with the module (features = 2).
    key = jax.random.PRNGKey(0)
    x = jax.random.normal(key, (8, 2), dtype=jnp.float32)

    out = jax.block_until_ready(xornet_forward(x, w1, b1, w2, b2))
    ref = reference_forward(x, w1, b1, w2, b2)
    assert out.shape == (8, 2) and out.dtype == jnp.float32
    assert jnp.allclose(out, ref, atol=1e-4, rtol=1e-4), (out, ref)

    # bf16 activation I/O path (halves HBM bytes on v6e/v7x; compute stays f32).
    x_bf16 = x.astype(jnp.bfloat16)
    out_bf16 = jax.block_until_ready(xornet_forward(x_bf16, w1, b1, w2, b2))
    assert out_bf16.shape == (8, 2) and out_bf16.dtype == jnp.bfloat16
    assert jnp.allclose(out_bf16.astype(jnp.float32), ref, atol=2e-2)

    print("KERNEL_OK")
</pallas_src>

<mosaic_0001>
module attributes {stable_mosaic.version = 11 : i64} {
  func.func @xornet_kernel(%arg0: i32, %arg1: memref<8x128xf32, #tpu.memory_space<vmem>>, %arg2: memref<16x128xf32, #tpu.memory_space<vmem>>, %arg3: memref<16x128xf32, #tpu.memory_space<vmem>>) attributes {dimension_semantics = [#tpu.dimension_semantics<parallel>], iteration_bounds = array<i64: 1>, scalar_prefetch = 0 : i64, scratch_operands = 0 : i64, tpu.core_type = #tpu.core_type<tc>, window_params = [{pipeline_mode = #tpu.pipeline_mode<synchronous>, transform_indices = @transform_0, window_bounds = array<i64: 8, 128>}, {transform_indices = @transform_1, window_bounds = array<i64: 16, 128>}, {transform_indices = @transform_2, window_bounds = array<i64: 16, 128>}]} {
    %c0 = arith.constant 0 : index
    %c0_0 = arith.constant 0 : index
    %0 = vector.load %arg2[%c0, %c0_0] : memref<16x128xf32, #tpu.memory_space<vmem>>, vector<16x128xf32>
    %c0_1 = arith.constant 0 : index
    %c0_2 = arith.constant 0 : index
    %1 = vector.load %arg1[%c0_1, %c0_2] : memref<8x128xf32, #tpu.memory_space<vmem>>, vector<1x128xf32>
    %c1 = arith.constant 1 : index
    %c0_3 = arith.constant 0 : index
    %2 = vector.load %arg1[%c1, %c0_3] : memref<8x128xf32, #tpu.memory_space<vmem>>, vector<1x128xf32>
    %c2 = arith.constant 2 : index
    %c0_4 = arith.constant 0 : index
    %3 = vector.load %arg1[%c2, %c0_4] : memref<8x128xf32, #tpu.memory_space<vmem>>, vector<1x128xf32>
    %c3 = arith.constant 3 : index
    %c0_5 = arith.constant 0 : index
    %4 = vector.load %arg1[%c3, %c0_5] : memref<8x128xf32, #tpu.memory_space<vmem>>, vector<1x128xf32>
    %c4 = arith.constant 4 : index
    %c0_6 = arith.constant 0 : index
    %5 = vector.load %arg1[%c4, %c0_6] : memref<8x128xf32, #tpu.memory_space<vmem>>, vector<1x128xf32>
    %c5 = arith.constant 5 : index
    %c0_7 = arith.constant 0 : index
    %6 = vector.load %arg1[%c5, %c0_7] : memref<8x128xf32, #tpu.memory_space<vmem>>, vector<1x128xf32>
    %c6 = arith.constant 6 : index
    %c0_8 = arith.constant 0 : index
    %7 = vector.load %arg1[%c6, %c0_8] : memref<8x128xf32, #tpu.memory_space<vmem>>, vector<1x128xf32>
    %c7 = arith.constant 7 : index
    %c0_9 = arith.constant 0 : index
    %8 = vector.load %arg1[%c7, %c0_9] : memref<8x128xf32, #tpu.memory_space<vmem>>, vector<1x128xf32>
    %c127_i32 = arith.constant 127 : i32
    %9 = tpu.dynamic_rotate %0 by %c127_i32 dim 1 : vector<16x128xf32>, i32 -> vector<16x128xf32>
    %c1_i32 = arith.constant 1 : i32
    %10 = tpu.dynamic_rotate %0 by %c1_i32 dim 1 : vector<16x128xf32>, i32 -> vector<16x128xf32>
    %11 = vector.broadcast %1 : vector<1x128xf32> to vector<16x128xf32>
    %12 = arith.mulf %0, %11 : vector<16x128xf32>
    %13 = vector.broadcast %2 : vector<1x128xf32> to vector<16x128xf32>
    %14 = arith.mulf %9, %13 : vector<16x128xf32>
    %15 = arith.addf %12, %14 : vector<16x128xf32>
    %16 = vector.broadcast %3 : vector<1x128xf32> to vector<16x128xf32>
    %17 = arith.mulf %10, %16 : vector<16x128xf32>
    %18 = arith.addf %15, %17 : vector<16x128xf32>
    %19 = vector.broadcast %4 : vector<1x128xf32> to vector<16x128xf32>
    %20 = arith.addf %18, %19 : vector<16x128xf32>
    %21 = math.tanh %20 : vector<16x128xf32>
    %cst = arith.constant 5.000000e-01 : f32
    %22 = vector.broadcast %cst : f32 to vector<16x128xf32>
    %23 = arith.mulf %22, %21 : vector<16x128xf32>
    %cst_10 = arith.constant 5.000000e-01 : f32
    %24 = vector.broadcast %cst_10 : f32 to vector<16x128xf32>
    %25 = arith.addf %23, %24 : vector<16x128xf32>
    %c127_i32_11 = arith.constant 127 : i32
    %26 = tpu.dynamic_rotate %25 by %c127_i32_11 dim 1 : vector<16x128xf32>, i32 -> vector<16x128xf32>
    %c1_i32_12 = arith.constant 1 : i32
    %27 = tpu.dynamic_rotate %25 by %c1_i32_12 dim 1 : vector<16x128xf32>, i32 -> vector<16x128xf32>
    %28 = vector.broadcast %5 : vector<1x128xf32> to vector<16x128xf32>
    %29 = arith.mulf %25, %28 : vector<16x128xf32>
    %30 = vector.broadcast %6 : vector<1x128xf32> to vector<16x128xf32>
    %31 = arith.mulf %26, %30 : vector<16x128xf32>
    %32 = arith.addf %29, %31 : vector<16x128xf32>
    %33 = vector.broadcast %7 : vector<1x128xf32> to vector<16x128xf32>
    %34 = arith.mulf %27, %33 : vector<16x128xf32>
    %35 = arith.addf %32, %34 : vector<16x128xf32>
    %36 = vector.broadcast %8 : vector<1x128xf32> to vector<16x128xf32>
    %37 = arith.addf %35, %36 : vector<16x128xf32>
    %38 = math.tanh %37 : vector<16x128xf32>
    %cst_13 = arith.constant 5.000000e-01 : f32
    %39 = vector.broadcast %cst_13 : f32 to vector<16x128xf32>
    %40 = arith.mulf %39, %38 : vector<16x128xf32>
    %cst_14 = arith.constant 5.000000e-01 : f32
    %41 = vector.broadcast %cst_14 : f32 to vector<16x128xf32>
    %42 = arith.addf %40, %41 : vector<16x128xf32>
    %c0_15 = arith.constant 0 : index
    %c0_16 = arith.constant 0 : index
    %43 = vector.load %arg3[%c0_15, %c0_16] : memref<16x128xf32, #tpu.memory_space<vmem>>, vector<16x128xf32>
    tpu.vector_store %arg3[%c0_15, %c0_16], %42 {strides = array<i32>} : memref<16x128xf32, #tpu.memory_space<vmem>>, vector<16x128xf32>,
    return
  }
  func.func @transform_0(%arg0: i32) -> (i32, i32) {
    %c0_i32 = arith.constant 0 : i32
    %c0_i32_0 = arith.constant 0 : i32
    %c0_i32_1 = arith.constant 0 : i32
    return %c0_i32, %c0_i32_0 : i32, i32
  }
  func.func @transform_1(%arg0: i32) -> (i32, i32) {
    %c0_i32 = arith.constant 0 : i32
    %c0_i32_0 = arith.constant 0 : i32
    return %arg0, %c0_i32 : i32, i32
  }
  func.func @transform_2(%arg0: i32) -> (i32, i32) {
    %c0_i32 = arith.constant 0 : i32
    %c0_i32_0 = arith.constant 0 : i32
    return %arg0, %c0_i32 : i32, i32
  }
}

</mosaic_0001>

<bundles_post_ra>
// kernel: xornet_forward.1
= control target key start
LH: loop header
LB: loop body
LE: loop exit
PB: predicated region body
PF: predicated region fallthrough
CT: control target
= control target key end

     0   :  { %s129_s11 = smov 127   ;;  %s130_s12 = smov 1   ;;  %s190_s1 = inlined_call_operand.vmem [shape: f32[16,128], index: 1, kind: input, shape index: {}]   ;;  %s191_s0 = inlined_call_operand.vmem [shape: f32[8,128], index: 0, kind: input, shape index: {}]   ;;  %s192_s2 = inlined_call_operand.vmem [shape: f32[16,128], index: 2, kind: output, shape index: {}]  }
   0x1   :  { %v11_v0 = vld [vmem:[%s190_s1] sm:$0xff]  ;;  %v12_v1 = vld [vmem:[%s190_s1 + $0x8] sm:$0xff] }
   0x2   :  { %21 = vrot.lane.b32.xlu0 %v11_v0, %s129_s11  ;;  %25 = vrot.lane.b32.xlu1 %v11_v0, %s130_s12  ;;  %v111_v2 = vld [vmem:[%s191_s0] ss:$0 sm:$0xff]  ;;  %v112_v3 = vld [vmem:[%s191_s0 + $0x1] ss:$0 sm:$0xff] }
   0x3   :  { %v113_v4 = vld [vmem:[%s191_s0 + $0x2] ss:$0 sm:$0xff]  ;;  %v33_v5 = vmul.f32 %v111_v2, %v11_v0  ;;  %v34_v10 = vmul.f32 %v111_v2, %v12_v1  ;;  %v114_v12 = vld [vmem:[%s191_s0 + $0x3] ss:$0 sm:$0xff]  ;;  %v116_v28 = vld [vmem:[%s191_s0 + $0x5] ss:$0 sm:$0xff] }
   0x4   :  { %v115_v29 = vld [vmem:[%s191_s0 + $0x4] ss:$0 sm:$0xff]  ;;  %v117_v32 = vld [vmem:[%s191_s0 + $0x6] ss:$0 sm:$0xff]  ;;  %v118_v39 = vld [vmem:[%s191_s0 + $0x7] ss:$0 sm:$0xff] }
   0x6   :  { %23 = vrot.lane.b32.xlu0 %v12_v1, %s129_s11  ;;  %27 = vrot.lane.b32.xlu1 %v12_v1, %s130_s12 }
  0x74   :  { %v22_v6 = vpop.permute.xlu0 %21  ;;  %v26_v7 = vpop.permute.xlu1 %25 }
  0x75   :  { %v39_v8 = vmul.f32 %v112_v3, %v22_v6  ;;  %v47_v9 = vmul.f32 %v113_v4, %v26_v7 }
  0x77   :  { %v41_v11 = vadd.f32 %v39_v8, %v33_v5 }
  0x78   :  { %v24_v13 = vpop.permute.xlu0 %23  ;;  %v28_v14 = vpop.permute.xlu1 %27 }
  0x79   :  { %v49_v15 = vadd.f32 %v47_v9, %v41_v11  ;;  %v40_v16 = vmul.f32 %v112_v3, %v24_v13  ;;  %v48_v17 = vmul.f32 %v113_v4, %v28_v14 }
  0x7b   :  { %v55_v18 = vadd.f32 %v114_v12, %v49_v15  ;;  %v42_v19 = vadd.f32 %v40_v16, %v34_v10 }
  0x7d   :  { %121 = vtanh.f32 %v55_v18  ;;  %v50_v20 = vadd.f32 %v48_v17, %v42_v19 }
  0x7f   :  { %v56_v21 = vadd.f32 %v114_v12, %v50_v20 }
  0x81   :  { %123 = vtanh.f32 %v56_v21 }
  0x8a   :  { %v122_v22 = vpop.eup %121 }
  0x8b   :  { %v59_v23 = vmul.f32 0.5, %v122_v22 }
  0x8d   :  { %v61_v24 = vadd.f32 0.5, %v59_v23 }
  0x8e   :  { %v124_v25 = vpop.eup %123 }
  0x8f   :  { %63 = vrot.lane.b32.xlu0 %v61_v24, %s129_s11  ;;  %v60_v26 = vmul.f32 0.5, %v124_v25  ;;  %v75_v33 = vmul.f32 %v115_v29, %v61_v24 }
  0x91   :  { %v62_v27 = vadd.f32 0.5, %v60_v26 }
  0x93   :  { %65 = vrot.lane.b32.xlu1 %v62_v27, %s129_s11  ;;  %67 = vrot.lane.b32.xlu0 %v61_v24, %s130_s12  ;;  %v76_v40 = vmul.f32 %v115_v29, %v62_v27 }
  0x97   :  { %69 = vrot.lane.b32.xlu1 %v62_v27, %s130_s12 }
 0x101   :  { %v64_v30 = vpop.permute.xlu0 %63 }
 0x102   :  { %v81_v31 = vmul.f32 %v116_v28, %v64_v30 }
 0x104   :  { %v83_v36 = vadd.f32 %v81_v31, %v75_v33 }
 0x105   :  { %v66_v34 = vpop.permute.xlu1 %65  ;;  %v68_v35 = vpop.permute.xlu0 %67 }
 0x106   :  { %v82_v37 = vmul.f32 %v116_v28, %v66_v34  ;;  %v89_v38 = vmul.f32 %v117_v32, %v68_v35 }
 0x108   :  { %v91_v41 = vadd.f32 %v89_v38, %v83_v36  ;;  %v84_v43 = vadd.f32 %v82_v37, %v76_v40 }
 0x109   :  { %v70_v42 = vpop.permute.xlu1 %69 }
 0x10a   :  { %v97_v44 = vadd.f32 %v118_v39, %v91_v41  ;;  %v90_v45 = vmul.f32 %v117_v32, %v70_v42 }
 0x10c   :  { %125 = vtanh.f32 %v97_v44  ;;  %v92_v46 = vadd.f32 %v90_v45, %v84_v43 }
 0x10e   :  { %v98_v47 = vadd.f32 %v118_v39, %v92_v46 }
 0x110   :  { %127 = vtanh.f32 %v98_v47 }
 0x119   :  { %v126_v48 = vpop.eup %125 }
 0x11a   :  { %v101_v49 = vmul.f32 0.5, %v126_v48 }
 0x11c   :  { %v103_v50 = vadd.f32 0.5, %v101_v49 }
 0x11d   :  { %v128_v51 = vpop.eup %127 }
 0x11e   :  { %105 = vst [vmem:[%s192_s2] sm:$0xff] %v103_v50  ;;  %v102_v52 = vmul.f32 0.5, %v128_v51 }
 0x120   :  { %v104_v53 = vadd.f32 0.5, %v102_v52 }
 0x122   :  { %106 = vst [vmem:[%s192_s2 + $0x8] sm:$0xff] %v104_v53 }

</bundles_post_ra>
